<compile_context>
chip_gen: v7x
topology: tpu7x:2x2x1
jax: 0.10.0
libtpu: 0.0.40
codegen_flags: <defaults>
</compile_context>

<pallas_src>
import os
import functools
from collections import defaultdict

import numpy as np
import jax
import jax.numpy as jnp
from jax.experimental import pallas as pl
from jax.experimental.pallas import tpu as pltpu


LEVELS = [' excellent', ' good', ' fair', ' poor', ' bad', ' high', ' low',
          ' fine', ' moderate', ' decent', ' average', ' medium', ' acceptable']

LPAD = 128          # lane-padded width of the gathered-column matmul / softmax
BF16_SUBLANES = 16  # bf16 packs 16 sublanes per vreg


def _round_up(x, m):
    return (x + m - 1) // m * m


# ----------------------------------------------------------------------------
# Kernel 1 (hot path): fused gathered LM-head + masked softmax expectation.
#   h_pad  [BP, H]  bf16   (BP = B padded to a multiple of 16 sublanes)
#   w_sel  [H, 128] bf16   (columns 0..12 = preferential ids, 13..17 = cal ids,
#                           remaining lanes zero)
# Outputs:
#   sel_logits [BP, 128] f32  (straight from the f32 MXU accumulator)
#   pred_mos   [BP, 1]   f32
# ----------------------------------------------------------------------------
def _fused_score_kernel(h_ref, w_ref, logits_ref, mos_ref, *, num_pref, num_cal):
    logits = jnp.dot(h_ref[...], w_ref[...],
                     preferred_element_type=jnp.float32)        # [BP, 128] f32
    logits_ref[...] = logits

    # Softmax over the 5 calibration lanes only (iota mask; nothing built on
    # the host).  exp(-inf) == 0, so no extra select around exp() is needed.
    col = jax.lax.broadcasted_iota(jnp.int32, logits.shape, dimension=1)
    cal_mask = (col >= num_pref) & (col < num_pref + num_cal)
    x = jnp.where(cal_mask, logits, -jnp.inf)
    m = jnp.max(x, axis=-1, keepdims=True)
    e = jnp.exp(x - m)                                           # 0 off the cal lanes
    inv_denom = pl.reciprocal(jnp.sum(e, axis=-1, keepdims=True), approx=True)
    p = e * inv_denom

    # MOS weights 5..1 are a pure function of the lane index on the cal lanes
    # (wt = num_pref + num_cal - col); p is exactly 0 elsewhere, so the junk
    # values of `wt` outside the cal lanes never contribute.
    wt = (num_pref + num_cal - col).astype(jnp.float32)
    mos_ref[...] = jnp.sum(p * wt, axis=-1, keepdims=True)


def fused_gather_score(h_pad, w_sel, *, num_pref, num_cal):
    BP, H = h_pad.shape
    Hw, L = w_sel.shape
    assert H == Hw and L == LPAD and BP % 8 == 0
    kernel = functools.partial(_fused_score_kernel,
                               num_pref=num_pref, num_cal=num_cal)
    return pl.pallas_call(
        kernel,
        out_shape=(
            jax.ShapeDtypeStruct((BP, LPAD), jnp.float32),
            jax.ShapeDtypeStruct((BP, 1), jnp.float32),
        ),
        grid_spec=pltpu.PrefetchScalarGridSpec(
            num_scalar_prefetch=0,
            grid=(1,),
            in_specs=[
                pl.BlockSpec((BP, H), lambda i: (0, 0)),
                pl.BlockSpec((H, LPAD), lambda i: (0, 0)),
            ],
            out_specs=(
                pl.BlockSpec((BP, LPAD), lambda i: (0, 0)),
                pl.BlockSpec((BP, 1), lambda i: (0, 0)),
            ),
        ),
        compiler_params=pltpu.CompilerParams(
            dimension_semantics=("arbitrary",),
        ),
    )(h_pad, w_sel)


# ----------------------------------------------------------------------------
# Kernel 2 (optional): full LM-head projection (B, H) @ (H, V) -> (B, V).
# Only used when the caller actually needs the whole logits row.
# ----------------------------------------------------------------------------
def _lm_head_kernel(h_ref, w_ref, o_ref):
    o_ref[...] = jnp.dot(
        h_ref[...], w_ref[...], preferred_element_type=jnp.float32
    ).astype(o_ref.dtype)


def lm_head_logits(h_last, w, *, tv=1536):
    """h_last: [B, H] bf16, w: [H, V] bf16 -> logits [B, V] bf16.

    tv=1536 divides the real Qwen2 vocab (152064 = 1536 * 99): per-tile weight
    DMA at H=3584 is ~10.5 MiB, ~21 MiB double-buffered.  The grid uses
    pl.cdiv(V, tv) so non-dividing tv / small test vocabs still work (ragged
    last block is masked by Pallas).  vmem_limit_bytes is derived from the
    actual footprint so v5e's 16 MiB scoped default is raised when needed;
    v6e/v7x are covered by the 32 MiB floor.
    """
    B, H = h_last.shape
    Hw, V = w.shape
    assert H == Hw

    tv = max(128, min(tv, _round_up(V, 128)))
    tv = _round_up(tv, 128)              # lane-aligned column tiles

    # Pad the batch (sublane) dim to 16 (bf16 sublane packing): unmasked vregs.
    BP = _round_up(max(B, 1), BF16_SUBLANES)
    if BP != B:
        h_last = jnp.pad(h_last, ((0, BP - B), (0, 0)))

    itm = jnp.dtype(h_last.dtype).itemsize
    out_itm = itm
    # Double-buffered footprint of the auto-pipeline (weights dominate).
    need = 2 * (H * tv * itm + BP * H * itm + BP * tv * out_itm)
    vmem_limit = int(max(32 << 20, need + (8 << 20)))

    cost = pl.CostEstimate(
        flops=2 * BP * H * V,
        transcendentals=0,
        bytes_accessed=H * V * itm + BP * H * itm + BP * V * out_itm,
    )

    out = pl.pallas_call(
        _lm_head_kernel,
        out_shape=jax.ShapeDtypeStruct((BP, V), h_last.dtype),
        grid_spec=pltpu.PrefetchScalarGridSpec(
            num_scalar_prefetch=0,
            grid=(pl.cdiv(V, tv),),
            in_specs=[
                pl.BlockSpec((BP, H), lambda j: (0, 0)),   # h reused every V tile
                pl.BlockSpec((H, tv), lambda j: (0, j)),   # weight column tile
            ],
            out_specs=pl.BlockSpec((BP, tv), lambda j: (0, j)),
        ),
        compiler_params=pltpu.CompilerParams(
            # "parallel" lets v7x's two TensorCores split the V loop (no-op on
            # single-TC v5e/v6e, so free to keep everywhere).
            dimension_semantics=("parallel",),
            vmem_limit_bytes=vmem_limit,
        ),
        cost_estimate=cost,
    )(h_last, w)
    return out[:B]


# ----------------------------------------------------------------------------
# Jitted numeric forward path (single Pallas call, no host syncs inside).
# ----------------------------------------------------------------------------
@functools.partial(jax.jit, static_argnames=("num_pref", "num_cal"))
def _forward_numeric(hidden_states, w_sel, *, num_pref, num_cal):
    h_last = hidden_states[:, -1, :]                      # logits[:, -1, :] selection
    B, _ = h_last.shape
    BP = _round_up(max(B, 1), BF16_SUBLANES)              # bf16: 16 sublanes/vreg
    h_pad = jnp.pad(h_last, ((0, BP - B), (0, 0)))        # fuses with the slice in XLA
    sel_logits, mos = fused_gather_score(
        h_pad, w_sel, num_pref=num_pref, num_cal=num_cal)
    pref = sel_logits[:B, :num_pref]                      # [B, 13] f32
    cal = sel_logits[:B, num_pref:num_pref + num_cal]     # [B, 5]  f32
    pred_mos = mos[:B, 0]                                 # [B]     f32
    return pref, cal, pred_mos


# ----------------------------------------------------------------------------
# Scorer module (JAX/Pallas equivalent of Qwen2QAlignScorer)
# ----------------------------------------------------------------------------
class Qwen2QAlignScorerPallas:
    def __init__(self, key, hidden=32, vocab=256, level=LEVELS):
        self.level = level
        self.dtype = jnp.bfloat16
        self.hidden = hidden
        self.vocab = vocab

        # Deterministic synthetic LM-head weight (no bias in Qwen2 lm_head).
        kw, = jax.random.split(key, 1)
        self.lm_head_w = (jax.random.normal(kw, (hidden, vocab), jnp.float32)
                          * (1.0 / hidden ** 0.5)).astype(self.dtype)

        # Deterministic synthetic token ids standing in for tokenizer output.
        # TODO(synk): real ids come from the Qwen2 tokenizer applied to `level`.
        self.cal_ids_ = jnp.array([3, 17, 42, 99, 123], jnp.int32)           # 5 ids
        self.preferential_ids_ = jnp.array(
            [3, 17, 42, 99, 123, 7, 11, 19, 55, 77, 101, 150, 200], jnp.int32
        )                                                                    # len(level)
        assert len(level) == int(self.preferential_ids_.shape[0])
        self.num_pref = int(self.preferential_ids_.shape[0])
        self.num_cal = int(self.cal_ids_.shape[0])
        self.weight_tensor = jnp.array([5, 4, 3, 2, 1], jnp.float32)
        # The fused kernel synthesizes the MOS weights from the lane index as
        # (num_pref + num_cal - lane); make sure that matches weight_tensor.
        assert np.allclose(
            np.asarray(self.weight_tensor),
            np.arange(self.num_cal, 0, -1, dtype=np.float32))

        # Precompute the gathered/packed scorer weights ONCE (ids are fixed at
        # init, exactly as in the PyTorch module).  Column layout is
        # [13 preferential | 5 calibration | zero padding] — this order must
        # stay consistent with the num_pref/num_cal offsets baked into the
        # in-kernel iota mask.
        sel_ids = jnp.concatenate([self.preferential_ids_, self.cal_ids_])    # [18]
        n_sel = int(sel_ids.shape[0])
        w_sel = jnp.take(self.lm_head_w, sel_ids, axis=1)                     # [H, 18]
        self.w_sel = jnp.pad(w_sel, ((0, 0), (0, LPAD - n_sel)))              # [H, 128]

    def forward(self, hidden_states, filenames=None, return_full_logits=False):
        """hidden_states: [B, S, H] bf16 — the backbone's last hidden states
        (one row per image, mirroring one model call per image path)."""
        B = hidden_states.shape[0]
        if filenames is None:
            filenames = [f"img_{i}.png" for i in range(B)]

        pref, _cal, pred_mos = _forward_numeric(
            hidden_states, self.w_sel,
            num_pref=self.num_pref, num_cal=self.num_cal)

        # Mirror the PyTorch `.to(self.dtype)` presentation of the preferential
        # logits; single device->host sync at the very end of the forward.
        pref_np, mos_np = jax.device_get(
            (pref.astype(self.dtype).astype(jnp.float32), pred_mos))

        output_logits = []
        for i in range(B):
            logits_dict = defaultdict(
                float, {lvl: float(v) for lvl, v in zip(self.level, pref_np[i])}
            )
            output_logits.append({
                'id': i,
                'filename': os.path.basename(filenames[i]),
                'logits': logits_dict,
                'pred_mos': float(mos_np[i]),
            })

        if return_full_logits:
            full_logits = lm_head_logits(hidden_states[:, -1, :], self.lm_head_w)
            return output_logits, pred_mos, full_logits
        return output_logits, pred_mos


if __name__ == "__main__":
    key = jax.random.PRNGKey(0)
    k_model, k_hidden = jax.random.split(key)

    B, S, H, V = 2, 8, 32, 256
    scorer = Qwen2QAlignScorerPallas(k_model, hidden=H, vocab=V, level=LEVELS)

    # Synthetic backbone output (stand-in for the Qwen2-VL forward per image).
    hidden_states = jax.random.normal(
        k_hidden, (B, S, H), jnp.float32).astype(jnp.bfloat16)

    outputs, pred_mos = scorer.forward(
        hidden_states, filenames=["imgA.png", "imgB.png"])
    jax.block_until_ready(pred_mos)

    mos = np.asarray(jax.device_get(pred_mos))
    assert mos.shape == (B,)
    # MOS is an expectation over weights 5..1; allow a tiny slack for the
    # approx-reciprocal softmax normalization.
    assert ((mos >= 1.0 - 1e-2) & (mos <= 5.0 + 1e-2)).all()

    # Cross-check the fused gathered-column kernel against the optional
    # full-vocab LM-head kernel + a plain-numpy softmax reference.
    full_logits = lm_head_logits(hidden_states[:, -1, :], scorer.lm_head_w)
    jax.block_until_ready(full_logits)
    full_np = np.asarray(jax.device_get(full_logits), dtype=np.float32)

    pref_ref = full_np[:, np.asarray(scorer.preferential_ids_)]
    pref_got = np.array(
        [[outputs[i]['logits'][lvl] for lvl in LEVELS] for i in range(B)],
        dtype=np.float32)
    np.testing.assert_allclose(pref_got, pref_ref, rtol=5e-2, atol=5e-2)

    cal_ref = full_np[:, np.asarray(scorer.cal_ids_)]
    e = np.exp(cal_ref - cal_ref.max(-1, keepdims=True))
    p = e / e.sum(-1, keepdims=True)
    mos_ref = p @ np.array([5, 4, 3, 2, 1], np.float32)
    np.testing.assert_allclose(mos, mos_ref, rtol=5e-2, atol=5e-2)

    print("KERNEL_OK")
</pallas_src>

<mosaic_0001>
module attributes {stable_mosaic.version = 11 : i64} {
  func.func @_fused_score_kernel(%arg0: i32, %arg1: memref<16x32xbf16, #tpu.memory_space<vmem>>, %arg2: memref<32x128xbf16, #tpu.memory_space<vmem>>, %arg3: memref<16x128xf32, #tpu.memory_space<vmem>>, %arg4: memref<16x1xf32, #tpu.memory_space<vmem>>) attributes {dimension_semantics = [#tpu.dimension_semantics<arbitrary>], iteration_bounds = array<i64: 1>, scalar_prefetch = 0 : i64, scratch_operands = 0 : i64, tpu.core_type = #tpu.core_type<tc>, window_params = [{pipeline_mode = #tpu.pipeline_mode<synchronous>, transform_indices = @transform_0, window_bounds = array<i64: 16, 32>}, {pipeline_mode = #tpu.pipeline_mode<synchronous>, transform_indices = @transform_1, window_bounds = array<i64: 32, 128>}, {pipeline_mode = #tpu.pipeline_mode<synchronous>, transform_indices = @transform_2, window_bounds = array<i64: 16, 128>}, {pipeline_mode = #tpu.pipeline_mode<synchronous>, transform_indices = @transform_3, window_bounds = array<i64: 16, 1>}]} {
    %c0 = arith.constant 0 : index
    %c0_0 = arith.constant 0 : index
    %0 = vector.load %arg1[%c0, %c0_0] : memref<16x32xbf16, #tpu.memory_space<vmem>>, vector<16x32xbf16>
    %c0_1 = arith.constant 0 : index
    %c0_2 = arith.constant 0 : index
    %1 = vector.load %arg2[%c0_1, %c0_2] : memref<32x128xbf16, #tpu.memory_space<vmem>>, vector<32x128xbf16>
    %cst = arith.constant dense<0.000000e+00> : vector<16x128xf32>
    %2 = tpu.matmul %0, %1, %cst {dimension_numbers = #tpu.dot_dimension_numbers<[1], [0], [0], [1], [0, 0, 1, 1], [], []>} : vector<16x32xbf16>, vector<32x128xbf16>, vector<16x128xf32> -> vector<16x128xf32>
    %c0_3 = arith.constant 0 : index
    %c0_4 = arith.constant 0 : index
    %3 = vector.load %arg3[%c0_3, %c0_4] : memref<16x128xf32, #tpu.memory_space<vmem>>, vector<16x128xf32>
    tpu.vector_store %arg3[%c0_3, %c0_4], %2 {strides = array<i32>} : memref<16x128xf32, #tpu.memory_space<vmem>>, vector<16x128xf32>,
    %4 = tpu.iota {dimensions = array<i32: 1>} : vector<16x128xi32>
    %c13_i32 = arith.constant 13 : i32
    %5 = vector.broadcast %c13_i32 : i32 to vector<16x128xi32>
    %6 = arith.cmpi sge, %4, %5 : vector<16x128xi32>
    %c18_i32 = arith.constant 18 : i32
    %7 = vector.broadcast %c18_i32 : i32 to vector<16x128xi32>
    %8 = arith.cmpi slt, %4, %7 : vector<16x128xi32>
    %9 = arith.andi %6, %8 : vector<16x128xi1>
    %cst_5 = arith.constant 0xFF800000 : f32
    %10 = vector.broadcast %cst_5 : f32 to vector<16x128xf32>
    %11 = arith.select %9, %2, %10 : vector<16x128xi1>, vector<16x128xf32>
    %cst_6 = arith.constant dense<0xFF800000> : vector<16xf32>
    %12 = vector.multi_reduction <maximumf>, %11, %cst_6 [1] : vector<16x128xf32> to vector<16xf32>
    %13 = vector.shape_cast %12 : vector<16xf32> to vector<16x1xf32>
    %14 = vector.broadcast %13 : vector<16x1xf32> to vector<16x128xf32>
    %15 = arith.subf %11, %14 : vector<16x128xf32>
    %16 = math.exp %15 : vector<16x128xf32>
    %cst_7 = arith.constant dense<0.000000e+00> : vector<16xf32>
    %17 = vector.multi_reduction <add>, %16, %cst_7 [1] : vector<16x128xf32> to vector<16xf32>
    %18 = vector.shape_cast %17 : vector<16xf32> to vector<16x1xf32>
    %19 = tpu.reciprocal %18 {approx = true} : vector<16x1xf32> -> vector<16x1xf32>
    %20 = vector.broadcast %19 : vector<16x1xf32> to vector<16x128xf32>
    %21 = arith.mulf %16, %20 : vector<16x128xf32>
    %c18_i32_8 = arith.constant 18 : i32
    %22 = vector.broadcast %c18_i32_8 : i32 to vector<16x128xi32>
    %23 = arith.subi %22, %4 : vector<16x128xi32>
    %24 = arith.sitofp %23 : vector<16x128xi32> to vector<16x128xf32>
    %25 = arith.mulf %21, %24 : vector<16x128xf32>
    %cst_9 = arith.constant dense<0.000000e+00> : vector<16xf32>
    %26 = vector.multi_reduction <add>, %25, %cst_9 [1] : vector<16x128xf32> to vector<16xf32>
    %27 = vector.shape_cast %26 : vector<16xf32> to vector<16x1xf32>
    %c0_10 = arith.constant 0 : index
    %c0_11 = arith.constant 0 : index
    %28 = vector.load %arg4[%c0_10, %c0_11] : memref<16x1xf32, #tpu.memory_space<vmem>>, vector<16x1xf32>
    tpu.vector_store %arg4[%c0_10, %c0_11], %27 {strides = array<i32>} : memref<16x1xf32, #tpu.memory_space<vmem>>, vector<16x1xf32>,
    return
  }
  func.func @transform_0(%arg0: i32) -> (i32, i32) {
    %c0_i32 = arith.constant 0 : i32
    %c0_i32_0 = arith.constant 0 : i32
    %c0_i32_1 = arith.constant 0 : i32
    return %c0_i32, %c0_i32_0 : i32, i32
  }
  func.func @transform_1(%arg0: i32) -> (i32, i32) {
    %c0_i32 = arith.constant 0 : i32
    %c0_i32_0 = arith.constant 0 : i32
    %c0_i32_1 = arith.constant 0 : i32
    return %c0_i32, %c0_i32_0 : i32, i32
  }
  func.func @transform_2(%arg0: i32) -> (i32, i32) {
    %c0_i32 = arith.constant 0 : i32
    %c0_i32_0 = arith.constant 0 : i32
    %c0_i32_1 = arith.constant 0 : i32
    return %c0_i32, %c0_i32_0 : i32, i32
  }
  func.func @transform_3(%arg0: i32) -> (i32, i32) {
    %c0_i32 = arith.constant 0 : i32
    %c0_i32_0 = arith.constant 0 : i32
    %c0_i32_1 = arith.constant 0 : i32
    return %c0_i32, %c0_i32_0 : i32, i32
  }
}

</mosaic_0001>

<bundles_post_ra>
// kernel: _forward_numeric.1
= control target key start
LH: loop header
LB: loop body
LE: loop exit
PB: predicated region body
PF: predicated region fallthrough
CT: control target
= control target key end

     0   :  { %v156_v0 = vmov 0.0   ;;  %vm157_vm0 = vmmov 0   ;;  %vm37_vm1 = vcmask 261120   ;;  %v84_v4 = vlaneseq  ;;  %s199_s1 = inlined_call_operand.vmem [shape: bf16[32,128], index: 1, kind: input, shape index: {}]   ;;  %s200_s0 = inlined_call_operand.vmem [shape: bf16[16,32], index: 0, kind: input, shape index: {}]   ;;  %s201_s2 = inlined_call_operand.vmem [shape: f32[16,128], index: 2, kind: output, shape index: {0}]   ;;  %s202_s3 = inlined_call_operand.vmem [shape: f32[16,1], index: 3, kind: output, shape index: {1}]  }
   0x1   :  { %135 = vmatprep.subr.bf16.mxu0 %v156_v0  ;;  %v145_v1 = vld [vmem:[%s199_s1] sm:$0xff]   ;;  %139 = vmatprep.mubr.msk.bf16.mxu0 %vm157_vm0, %v156_v0  ;;  %v146_v2 = vld [vmem:[%s199_s1 + $0x8] sm:$0xff]   ;;  %vm117_vm5 = vcmask 7168  }
   0x2   :  { %136 = vmatpush3.bf16.msra.mxu0 %v145_v1  ;;  %v147_v3 = vld [vmem:[%s200_s0] sm:$0xff]   ;;  %v85_v5 = vand.u32 127, %v84_v4 }
   0x3   :  { %137 = vmatprep.subr.bf16.mxu0 %v156_v0 }
   0x4   :  { %vm86_vm2 = vcmp.ge.s32.totalorder %v85_v5, 13  ;;  %vm87_vm3 = vcmp.lt.s32.totalorder %v85_v5, 18  ;;  %v109_v22 = vsub.s32 18, %v85_v5 }
   0x5   :  { %vm88_vm4 = vmand %vm86_vm2, %vm87_vm3 }
   0x6   :  { %138 = vmatpush3.bf16.msra.mxu0 %v146_v2  ;;  %v110_v23 = vcvt.s32.f32 %v109_v22 }
   0x9   :  { %140 = vmatmul.mubr.msk.bf16.vlgmr.msra.gmra.mrb[0].mxu0 %vm37_vm1, %v147_v3 }
  0xdc   :  { %v75_v6 = vpop.f32.mrb[0].mxu0 }
  0xdd   :  { %82 = vst [vmem:[%s201_s2] sm:$0xff] %v75_v6  ;;  %v141_v7 = vpop.f32.mrb[1].mxu0  ;;  %v89_v8 = vsel %vm88_vm4, %v75_v6, -inf }
  0xde   :  { %91 = vmax.xlane.f32.xlu0 %v89_v8  ;;  %v78_v9 = vpop.f32.mrb[2].mxu0 }
  0xdf   :  { %83 = vst [vmem:[%s201_s2 + $0x8] sm:$0xff] %v78_v9  ;;  %v142_v10 = vpop.f32.mrb[3].mxu0  ;;  %v90_v11 = vsel %vm88_vm4, %v78_v9, -inf }
  0xe2   :  { %93 = vmax.xlane.f32.xlu0 %v90_v11 }
 0x16b   :  { %v92_v12 = vpop.xlane.xlu0 %91 }
 0x16c   :  { %v95_v13 = vsub.f32 %v89_v8, %v92_v12 }
 0x16e   :  { %v97_v14 = vmul.f32 1.442695, %v95_v13 }
 0x16f   :  { %v94_v15 = vpop.xlane.xlu0 %93 }
 0x170   :  { %148 = vpow2.f32 %v97_v14  ;;  %v96_v16 = vsub.f32 %v90_v11, %v94_v15 }
 0x172   :  { %v99_v17 = vmul.f32 1.442695, %v96_v16 }
 0x174   :  { %150 = vpow2.f32 %v99_v17 }
 0x17a   :  { %v149_v18 = vpop.eup %148 }
 0x17b   :  { %101 = vadd.xlane.f32.xlu1 %v149_v18 }
 0x17e   :  { %v151_v19 = vpop.eup %150 }
 0x17f   :  { %103 = vadd.xlane.f32.xlu1 %v151_v19 }
 0x208   :  { %v102_v20 = vpop.xlane.xlu1 %101 }
 0x209   :  { %152 = vrcp.f32 %v102_v20 }
 0x20c   :  { %v104_v21 = vpop.xlane.xlu1 %103 }
 0x20d   :  { %154 = vrcp.f32 %v104_v21 }
 0x213   :  { %v153_v24 = vpop.eup %152 }
 0x214   :  { %v107_v25 = vmul.f32 %v153_v24, %v149_v18 }
 0x216   :  { %v111_v26 = vmul.f32 %v110_v23, %v107_v25 }
 0x217   :  { %v155_v27 = vpop.eup %154 }
 0x218   :  { %113 = vadd.xlane.f32.xlu0 %v111_v26  ;;  %v108_v28 = vmul.f32 %v155_v27, %v151_v19 }
 0x21a   :  { %v112_v29 = vmul.f32 %v110_v23, %v108_v28 }
 0x21c   :  { %115 = vadd.xlane.f32.xlu1 %v112_v29 }
 0x2a5   :  { %v114_v30 = vpop.xlane.xlu0 %113 }
 0x2a6   :  { %118 = vst.msk [vmem:[%s202_s3] sm:$0xff] %vm117_vm5, %v114_v30 }
 0x2a9   :  { %v116_v31 = vpop.xlane.xlu1 %115 }
 0x2aa   :  { %119 = vst.msk [vmem:[%s202_s3 + $0x8] sm:$0xff] %vm117_vm5, %v116_v31 }

</bundles_post_ra>
